<compile_context>
chip_gen: v7x
topology: tpu7x:2x2x1
jax: 0.10.0
libtpu: 0.0.40
codegen_flags: <defaults>
</compile_context>

<pallas_src>
import functools
import math

import jax
import jax.numpy as jnp
from jax import lax
from jax.experimental import pallas as pl
from jax.experimental.pallas import tpu as pltpu


# ----------------------------- Pallas kernel --------------------------------
def _pinn_kernel(xemb_ref, prep_ref, w2_ref, b2_ref, w3_ref, b3_ref,
                 w4t_ref, b4t_ref, y_ref, *, n_p):
    """One grid step: tile_nx x-rows x all n_p p-rows -> (out_dim, tile_m) y^T block.

    Row order inside the tile is p-major: row s = p_idx * tile_nx + x_idx.
    """
    f32 = jnp.float32
    cdt = w2_ref.dtype

    # --- layer 1 via the concat split (no MXU, no selection matrices):
    #     x part  = n_p stacked copies of the x-embedding block (sublane concat),
    #     p part  = pre-tiled (tile_m, H) resident input,
    #     preact  = x part + p part  (VPU add), tanh in f32 (EUP).
    xe = xemb_ref[...]                                   # (tile_nx, H)
    x_t = jnp.concatenate([xe] * n_p, axis=0)            # (tile_m, H)
    h = jnp.tanh(x_t + prep_ref[...])

    # --- hidden layers: bf16 MXU inputs, f32 accumulation, f32 tanh.
    h = jnp.tanh(jnp.dot(h.astype(cdt), w2_ref[...],
                         preferred_element_type=f32) + b2_ref[...])
    h = jnp.tanh(jnp.dot(h.astype(cdt), w3_ref[...],
                         preferred_element_type=f32) + b3_ref[...])

    # --- final layer computed transposed so the output block is lane-dense:
    #     y^T[o, m] = sum_h W4^T[o, h] * h[m, h]   -> (out_dim, tile_m).
    y_t = lax.dot_general(w4t_ref[...], h.astype(cdt),
                          dimension_numbers=(((1,), (1,)), ((), ())),
                          preferred_element_type=f32) + b4t_ref[...]
    y_ref[...] = y_t.astype(y_ref.dtype)


# ------------------------------ helpers --------------------------------------
def _round_up(a, m):
    return ((a + m - 1) // m) * m


def _lcm(a, b):
    return a * b // math.gcd(a, b)


def _choose_tile_nx(nx, n_p, target_rows):
    """x-rows per grid step.

    Constraints: tile_nx % 8 == 0 (sublane alignment) and
    tile_nx * n_p % 128 == 0 (lane-dense y^T block).
    """
    unit = _lcm(8, 128 // math.gcd(n_p, 128))
    t = max(unit, (max(1, target_rows // max(1, n_p)) // unit) * unit)
    nx_unit = _round_up(max(1, nx), unit)
    if nx_unit <= t:
        # Whole (padded) batch fits in one tile; split in two when possible so
        # both v7x TensorCores get a "parallel" grid step.
        half = _round_up((nx_unit + 1) // 2, unit)
        t = half if half < nx_unit else nx_unit
    return t


def _default_use_bf16():
    """bf16 MXU inputs on every TPU generation (v5e/v5p/v6e/v7x are bf16-native)."""
    try:
        return jax.devices()[0].platform == "tpu"
    except Exception:
        return False


# ------------------------------ forward (wrapper) -----------------------------
def pinn_forward(x, p, params, *, target_rows=4096, use_bf16=None):
    """Returns (z, network(z)) exactly like PINN.forward.

    z is pure data movement and is built in the wrapper; the Pallas kernel
    computes y with a lane-dense transposed output. Assumes a moderate number
    of parameter samples n_p (the pre-tiled p embedding block is VMEM-resident).
    """
    (w1, b1), (w2, b2), (w3, b3), (w4, b4) = params
    nx, dx = x.shape
    n_p, dp = p.shape
    dz = dx + dp
    in_features = w1.shape[0]
    if dz != in_features:
        raise ValueError(
            f"Input dimensions do not match. Expected {in_features}, but got {dz}.")
    hidden = w1.shape[1]
    out_dim = w4.shape[1]
    if use_bf16 is None:
        use_bf16 = _default_use_bf16()

    f32 = jnp.float32

    # --- combine_input (exact by construction, wrapper-side XLA).
    z = jnp.concatenate([jnp.repeat(x, n_p, axis=0), jnp.tile(p, (nx, 1))], axis=1)

    # --- layer-1 split precompute:  z@W1 + b1 == repeat(x@W1x) + tile(p@W1p + b1).
    x_emb = x.astype(f32) @ w1[:dx].astype(f32)                    # (nx,  H)
    p_emb = p.astype(f32) @ w1[dx:].astype(f32) + b1.astype(f32)   # (n_p, H)

    tile_nx = _choose_tile_nx(nx, n_p, target_rows)
    nx_pad = _round_up(nx, tile_nx)
    tile_m = tile_nx * n_p
    nsteps = nx_pad // tile_nx

    if nx_pad != nx:      # row-pad x embedding to a tile multiple (sliced away later)
        x_emb = jnp.concatenate(
            [x_emb, jnp.zeros((nx_pad - nx, hidden), f32)], axis=0)

    # p contribution pre-tiled to the per-step row count (p-major order), identical
    # for every grid step -> single VMEM-resident input.
    p_rep = jnp.repeat(p_emb, tile_nx, axis=0)                     # (tile_m, H)

    cdt = jnp.bfloat16 if use_bf16 else f32
    w2c, w3c = w2.astype(cdt), w3.astype(cdt)
    w4t = w4.T.astype(cdt)                                         # (out_dim, H)
    b2f, b3f = b2.astype(f32), b3.astype(f32)
    b4t = b4.T.astype(f32)                                         # (out_dim, 1)

    whole = lambda i: (0, 0)
    kernel = functools.partial(_pinn_kernel, n_p=n_p)

    y_t = pl.pallas_call(
        kernel,
        out_shape=jax.ShapeDtypeStruct((out_dim, nx_pad * n_p), f32),
        grid_spec=pltpu.PrefetchScalarGridSpec(
            num_scalar_prefetch=0,
            grid=(nsteps,),
            in_specs=[
                pl.BlockSpec((tile_nx, hidden), lambda i: (i, 0)),  # x_emb (streamed)
                pl.BlockSpec((tile_m, hidden), whole),              # p_rep (resident)
                pl.BlockSpec((hidden, hidden), whole),              # w2
                pl.BlockSpec((1, hidden), whole),                   # b2
                pl.BlockSpec((hidden, hidden), whole),              # w3
                pl.BlockSpec((1, hidden), whole),                   # b3
                pl.BlockSpec((out_dim, hidden), whole),             # w4^T
                pl.BlockSpec((out_dim, 1), whole),                  # b4^T
            ],
            out_specs=pl.BlockSpec((out_dim, tile_m), lambda i: (0, i)),  # y^T (lane-dense)
        ),
        compiler_params=pltpu.CompilerParams(
            dimension_semantics=("parallel",)),
    )(x_emb, p_rep, w2c, b2f, w3c, b3f, w4t, b4t)

    # Recover the x-major / p-minor row order and drop padded x rows.
    y = (y_t.reshape(out_dim, nsteps, n_p, tile_nx)
             .transpose(1, 3, 2, 0)                 # (nsteps, tile_nx, n_p, out_dim)
             .reshape(nx_pad, n_p, out_dim)[:nx]
             .reshape(nx * n_p, out_dim))
    return z, y


# ------------------------------ parameter init --------------------------------
def init_params(key, in_dim, hidden, out_dim):
    """Deterministic init; weights stored transposed as (in, out), biases (1, out)."""
    dims = [(in_dim, hidden), (hidden, hidden), (hidden, hidden), (hidden, out_dim)]
    params = []
    for i, (d_in, d_out) in enumerate(dims):
        kw, kb = jax.random.split(jax.random.fold_in(key, i))
        bound = 1.0 / jnp.sqrt(jnp.float32(d_in))   # torch.nn.Linear default range
        w = jax.random.uniform(kw, (d_in, d_out), jnp.float32, -bound, bound)
        b = jax.random.uniform(kb, (1, d_out), jnp.float32, -bound, bound)
        params.append((w, b))
    return params


# ------------------------------ plain-JAX reference ---------------------------
def _reference_forward(x, p, params):
    n_p, nx = p.shape[0], x.shape[0]
    z = jnp.concatenate([jnp.repeat(x, n_p, axis=0), jnp.tile(p, (nx, 1))], axis=1)
    h = z
    for i, (w, b) in enumerate(params):
        h = h @ w + b
        if i < len(params) - 1:
            h = jnp.tanh(h)
    return z, h


if __name__ == "__main__":
    key = jax.random.PRNGKey(0)
    k_x, k_p, k_x2, k_w = jax.random.split(key, 4)

    hidden, out_dim = 32, 1
    dx, dp = 2, 2
    params = init_params(k_w, dx + dp, hidden, out_dim)
    use_bf16 = _default_use_bf16()
    tol = 3e-2 if use_bf16 else 1e-5

    # Case 1: tiny batch (Nx*Np = 32), single grid step.
    Nx, Np = 4, 8
    x = jax.random.normal(k_x, (Nx, dx), jnp.float32)
    p = jax.random.normal(k_p, (Np, dp), jnp.float32)
    z, y = pinn_forward(x, p, params, use_bf16=use_bf16)
    jax.block_until_ready((z, y))
    z_ref, y_ref = _reference_forward(x, p, params)
    assert z.shape == (Nx * Np, dx + dp) and y.shape == (Nx * Np, out_dim)
    assert bool(jnp.array_equal(z, z_ref))           # z exact by construction
    assert jnp.allclose(y, y_ref, atol=tol, rtol=tol)

    # Case 2: Nx not a multiple of the tile (exercises row padding + 2 grid steps).
    Nx2 = 20
    x2 = jax.random.normal(k_x2, (Nx2, dx), jnp.float32)
    z2, y2 = pinn_forward(x2, p, params, use_bf16=use_bf16)
    jax.block_until_ready((z2, y2))
    z2_ref, y2_ref = _reference_forward(x2, p, params)
    assert z2.shape == (Nx2 * Np, dx + dp) and y2.shape == (Nx2 * Np, out_dim)
    assert bool(jnp.array_equal(z2, z2_ref))
    assert jnp.allclose(y2, y2_ref, atol=tol, rtol=tol)

    # TODO(synk): save()/load() checkpoint I/O from the torch module is host-side
    # file handling and is intentionally not reproduced as a kernel.
    print("KERNEL_OK")
</pallas_src>

<mosaic_0001>
module attributes {stable_mosaic.version = 11 : i64} {
  func.func @_pinn_kernel(%arg0: i32, %arg1: memref<16x32xf32, #tpu.memory_space<vmem>>, %arg2: memref<128x32xf32, #tpu.memory_space<vmem>>, %arg3: memref<32x32xf32, #tpu.memory_space<vmem>>, %arg4: memref<1x32xf32, #tpu.memory_space<vmem>>, %arg5: memref<32x32xf32, #tpu.memory_space<vmem>>, %arg6: memref<1x32xf32, #tpu.memory_space<vmem>>, %arg7: memref<1x32xf32, #tpu.memory_space<vmem>>, %arg8: memref<1x1xf32, #tpu.memory_space<vmem>>, %arg9: memref<1x128xf32, #tpu.memory_space<vmem>>) attributes {dimension_semantics = [#tpu.dimension_semantics<parallel>], iteration_bounds = array<i64: 1>, scalar_prefetch = 0 : i64, scratch_operands = 0 : i64, tpu.core_type = #tpu.core_type<tc>, window_params = [{transform_indices = @transform_0, window_bounds = array<i64: 16, 32>}, {pipeline_mode = #tpu.pipeline_mode<synchronous>, transform_indices = @transform_1, window_bounds = array<i64: 128, 32>}, {pipeline_mode = #tpu.pipeline_mode<synchronous>, transform_indices = @transform_2, window_bounds = array<i64: 32, 32>}, {pipeline_mode = #tpu.pipeline_mode<synchronous>, transform_indices = @transform_3, window_bounds = array<i64: 1, 32>}, {pipeline_mode = #tpu.pipeline_mode<synchronous>, transform_indices = @transform_4, window_bounds = array<i64: 32, 32>}, {pipeline_mode = #tpu.pipeline_mode<synchronous>, transform_indices = @transform_5, window_bounds = array<i64: 1, 32>}, {pipeline_mode = #tpu.pipeline_mode<synchronous>, transform_indices = @transform_6, window_bounds = array<i64: 1, 32>}, {pipeline_mode = #tpu.pipeline_mode<synchronous>, transform_indices = @transform_7, window_bounds = array<i64: 1, 1>}, {transform_indices = @transform_8, window_bounds = array<i64: 1, 128>}]} {
    %c0 = arith.constant 0 : index
    %c0_0 = arith.constant 0 : index
    %0 = vector.load %arg1[%c0, %c0_0] : memref<16x32xf32, #tpu.memory_space<vmem>>, vector<16x32xf32>
    %1 = tpu.concatenate %0, %0, %0, %0, %0, %0, %0, %0 in 0 : vector<16x32xf32>, vector<16x32xf32>, vector<16x32xf32>, vector<16x32xf32>, vector<16x32xf32>, vector<16x32xf32>, vector<16x32xf32>, vector<16x32xf32> -> vector<128x32xf32>
    %c0_1 = arith.constant 0 : index
    %c0_2 = arith.constant 0 : index
    %2 = vector.load %arg2[%c0_1, %c0_2] : memref<128x32xf32, #tpu.memory_space<vmem>>, vector<128x32xf32>
    %3 = arith.addf %1, %2 : vector<128x32xf32>
    %4 = math.tanh %3 : vector<128x32xf32>
    %c0_3 = arith.constant 0 : index
    %c0_4 = arith.constant 0 : index
    %5 = vector.load %arg3[%c0_3, %c0_4] : memref<32x32xf32, #tpu.memory_space<vmem>>, vector<32x32xf32>
    %cst = arith.constant dense<0.000000e+00> : vector<128x32xf32>
    %6 = tpu.matmul %4, %5, %cst {dimension_numbers = #tpu.dot_dimension_numbers<[1], [0], [0], [1], [0, 0, 1, 1], [], []>} : vector<128x32xf32>, vector<32x32xf32>, vector<128x32xf32> -> vector<128x32xf32>
    %c0_5 = arith.constant 0 : index
    %c0_6 = arith.constant 0 : index
    %7 = vector.load %arg4[%c0_5, %c0_6] : memref<1x32xf32, #tpu.memory_space<vmem>>, vector<1x32xf32>
    %8 = vector.broadcast %7 : vector<1x32xf32> to vector<128x32xf32>
    %9 = arith.addf %6, %8 : vector<128x32xf32>
    %10 = math.tanh %9 : vector<128x32xf32>
    %c0_7 = arith.constant 0 : index
    %c0_8 = arith.constant 0 : index
    %11 = vector.load %arg5[%c0_7, %c0_8] : memref<32x32xf32, #tpu.memory_space<vmem>>, vector<32x32xf32>
    %cst_9 = arith.constant dense<0.000000e+00> : vector<128x32xf32>
    %12 = tpu.matmul %10, %11, %cst_9 {dimension_numbers = #tpu.dot_dimension_numbers<[1], [0], [0], [1], [0, 0, 1, 1], [], []>} : vector<128x32xf32>, vector<32x32xf32>, vector<128x32xf32> -> vector<128x32xf32>
    %c0_10 = arith.constant 0 : index
    %c0_11 = arith.constant 0 : index
    %13 = vector.load %arg6[%c0_10, %c0_11] : memref<1x32xf32, #tpu.memory_space<vmem>>, vector<1x32xf32>
    %14 = vector.broadcast %13 : vector<1x32xf32> to vector<128x32xf32>
    %15 = arith.addf %12, %14 : vector<128x32xf32>
    %16 = math.tanh %15 : vector<128x32xf32>
    %c0_12 = arith.constant 0 : index
    %c0_13 = arith.constant 0 : index
    %17 = vector.load %arg7[%c0_12, %c0_13] : memref<1x32xf32, #tpu.memory_space<vmem>>, vector<1x32xf32>
    %cst_14 = arith.constant dense<0.000000e+00> : vector<1x128xf32>
    %18 = tpu.matmul %17, %16, %cst_14 {dimension_numbers = #tpu.dot_dimension_numbers<[1], [1], [0], [0], [0, 0, 1, 0], [], []>} : vector<1x32xf32>, vector<128x32xf32>, vector<1x128xf32> -> vector<1x128xf32>
    %c0_15 = arith.constant 0 : index
    %c0_16 = arith.constant 0 : index
    %19 = vector.load %arg8[%c0_15, %c0_16] : memref<1x1xf32, #tpu.memory_space<vmem>>, vector<1x1xf32>
    %20 = vector.broadcast %19 : vector<1x1xf32> to vector<1x128xf32>
    %21 = arith.addf %18, %20 : vector<1x128xf32>
    %c0_17 = arith.constant 0 : index
    %c0_18 = arith.constant 0 : index
    %22 = vector.load %arg9[%c0_17, %c0_18] : memref<1x128xf32, #tpu.memory_space<vmem>>, vector<1x128xf32>
    tpu.vector_store %arg9[%c0_17, %c0_18], %21 {strides = array<i32>} : memref<1x128xf32, #tpu.memory_space<vmem>>, vector<1x128xf32>,
    return
  }
  func.func @transform_0(%arg0: i32) -> (i32, i32) {
    %c0_i32 = arith.constant 0 : i32
    %c0_i32_0 = arith.constant 0 : i32
    return %arg0, %c0_i32 : i32, i32
  }
  func.func @transform_1(%arg0: i32) -> (i32, i32) {
    %c0_i32 = arith.constant 0 : i32
    %c0_i32_0 = arith.constant 0 : i32
    %c0_i32_1 = arith.constant 0 : i32
    return %c0_i32, %c0_i32_0 : i32, i32
  }
  func.func @transform_2(%arg0: i32) -> (i32, i32) {
    %c0_i32 = arith.constant 0 : i32
    %c0_i32_0 = arith.constant 0 : i32
    %c0_i32_1 = arith.constant 0 : i32
    return %c0_i32, %c0_i32_0 : i32, i32
  }
  func.func @transform_3(%arg0: i32) -> (i32, i32) {
    %c0_i32 = arith.constant 0 : i32
    %c0_i32_0 = arith.constant 0 : i32
    %c0_i32_1 = arith.constant 0 : i32
    return %c0_i32, %c0_i32_0 : i32, i32
  }
  func.func @transform_4(%arg0: i32) -> (i32, i32) {
    %c0_i32 = arith.constant 0 : i32
    %c0_i32_0 = arith.constant 0 : i32
    %c0_i32_1 = arith.constant 0 : i32
    return %c0_i32, %c0_i32_0 : i32, i32
  }
  func.func @transform_5(%arg0: i32) -> (i32, i32) {
    %c0_i32 = arith.constant 0 : i32
    %c0_i32_0 = arith.constant 0 : i32
    %c0_i32_1 = arith.constant 0 : i32
    return %c0_i32, %c0_i32_0 : i32, i32
  }
  func.func @transform_6(%arg0: i32) -> (i32, i32) {
    %c0_i32 = arith.constant 0 : i32
    %c0_i32_0 = arith.constant 0 : i32
    %c0_i32_1 = arith.constant 0 : i32
    return %c0_i32, %c0_i32_0 : i32, i32
  }
  func.func @transform_7(%arg0: i32) -> (i32, i32) {
    %c0_i32 = arith.constant 0 : i32
    %c0_i32_0 = arith.constant 0 : i32
    %c0_i32_1 = arith.constant 0 : i32
    return %c0_i32, %c0_i32_0 : i32, i32
  }
  func.func @transform_8(%arg0: i32) -> (i32, i32) {
    %c0_i32 = arith.constant 0 : i32
    %c0_i32_0 = arith.constant 0 : i32
    return %c0_i32, %arg0 : i32, i32
  }
}

</mosaic_0001>

<bundles_post_ra>
// kernel: tpu_custom_call.1
= control target key start
LH: loop header
LB: loop body
LE: loop exit
PB: predicated region body
PF: predicated region fallthrough
CT: control target
= control target key end

     0   :  { %s1322_s0 = inlined_call_operand.vmem [shape: f32[16,32], index: 0, kind: input, shape index: {}]   ;;  %s1323_s1 = inlined_call_operand.vmem [shape: f32[128,32], index: 1, kind: input, shape index: {}]   ;;  %s1324_s2 = inlined_call_operand.vmem [shape: f32[32,32], index: 2, kind: input, shape index: {}]   ;;  %s1325_s3 = inlined_call_operand.vmem [shape: f32[1,32], index: 3, kind: input, shape index: {}]   ;;  %s1326_s4 = inlined_call_operand.vmem [shape: f32[32,32], index: 4, kind: input, shape index: {}]   ;;  %s1327_s5 = inlined_call_operand.vmem [shape: f32[1,32], index: 5, kind: input, shape index: {}]   ;;  %s1328_s6 = inlined_call_operand.vmem [shape: f32[1,32], index: 6, kind: input, shape index: {}]   ;;  %s1329_s7 = inlined_call_operand.<no memory space> [shape: f32[1,1], index: 7, kind: input, shape index: {}]   ;;  %s1330_s8 = inlined_call_operand.hbm [shape: f32[1,128], index: 8, kind: output, shape index: {}]  }
   0x1   :  { %v13_v0 = vstv %s1329_s7 }
   0x2   :  { %14 = vst [vmem:[#allocation2] sm:$0x1] %v13_v0 }
   0x3   :  { %v82_v1 = vld [vmem:[%s1324_s2] sm:$0xff]  ;;  %v83_v2 = vld [vmem:[%s1324_s2 + $0x8] sm:$0xff]  ;;  %v84_v3 = vld [vmem:[%s1324_s2 + $0x10] sm:$0xff] }
   0x4   :  { %v877_v4 = vpack.c.bf16 %v83_v2, %v82_v1  ;;  %v85_v5 = vld [vmem:[%s1324_s2 + $0x18] sm:$0xff]  ;;  %v1119_v6 = vld [vmem:[%s1322_s0] sm:$0xff]  ;;  %v36_v9 = vld [vmem:[%s1323_s1 + $0x10] sm:$0xff] }
   0x5   :  { %v34_v7 = vld [vmem:[%s1323_s1] sm:$0xff]  ;;  %v881_v8 = vpack.c.bf16 %v85_v5, %v84_v3  ;;  %v52_v12 = vadd.f32 %v36_v9, %v1119_v6  ;;  %v1135_v13 = vld [vmem:[%s1322_s0 + $0x8] sm:$0xff]  ;;  %v37_v16 = vld [vmem:[%s1323_s1 + $0x18] sm:$0xff] }
   0x6   :  { %v50_v10 = vadd.f32 %v34_v7, %v1119_v6  ;;  %878 = vmatprep.subr.bf16.mxu1 %v877_v4  ;;  %v38_v11 = vld [vmem:[%s1323_s1 + $0x20] sm:$0xff]  ;;  %v35_v14 = vld [vmem:[%s1323_s1 + $0x8] sm:$0xff]  ;;  %v53_v18 = vadd.f32 %v37_v16, %v1135_v13  ;;  %v40_v20 = vld [vmem:[%s1323_s1 + $0x30] sm:$0xff] }
   0x7   :  { %880 = vmatpush3.bf16.msra.mxu1 %v877_v4  ;;  %v51_v15 = vadd.f32 %v35_v14, %v1135_v13  ;;  %v54_v17 = vadd.f32 %v38_v11, %v1119_v6  ;;  %v39_v19 = vld [vmem:[%s1323_s1 + $0x28] sm:$0xff]  ;;  %v303_v21 = vld [vmem:[%s1326_s4] sm:$0xff] }
   0x8   :  { %931 = vtanh.f32 %v50_v10  ;;  %882 = vmatprep.subr.bf16.mxu1 %v881_v8  ;;  %v304_v22 = vld [vmem:[%s1326_s4 + $0x8] sm:$0xff] }
   0x9   :  { %933 = vtanh.f32 %v52_v12  ;;  %v885_v23 = vpack.c.bf16 %v304_v22, %v303_v21 }
   0xa   :  { %935 = vtanh.f32 %v51_v15 }
   0xb   :  { %884 = vmatpush3.bf16.msra.mxu1 %v881_v8 }
   0xc   :  { %15 = vsyncpa [#allocation4], 0  ;;  %937 = vtanh.f32 %v53_v18  ;;  %v55_v24 = vadd.f32 %v39_v19, %v1135_v13  ;;  %v56_v25 = vadd.f32 %v40_v20, %v1119_v6  ;;  %v41_v26 = vld [vmem:[%s1323_s1 + $0x38] sm:$0xff]  ;;  %886 = vmatprep.subr.bf16.mxu1 %v885_v23  ;;  %v42_v27 = vld [vmem:[%s1323_s1 + $0x40] sm:$0xff]  ;;  %vm93_vm0 = vcmask 261120   ;;  %s1055_s11 = smov [#allocation3]  }
   0xd   :  { %939 = vtanh.f32 %v54_v17  ;;  %v57_v28 = vadd.f32 %v41_v26, %v1135_v13  ;;  %v305_v29 = vld [vmem:[%s1326_s4 + $0x10] sm:$0xff]  ;;  %v306_v30 = vld [vmem:[%s1326_s4 + $0x18] sm:$0xff]  ;;  %v58_v32 = vadd.f32 %v42_v27, %v1119_v6  ;;  %v43_v33 = vld [vmem:[%s1323_s1 + $0x48] sm:$0xff]  ;;  %vm1052_vm1 = vmmov 0   ;;  %s662_s12 = sshll.u32 %s1055_s11, 4  ;;  %s663_s12 = int_to_ptr.vmem [resolvable:$true] %s662_s12 }
   0xe   :  { %941 = vtanh.f32 %v55_v24  ;;  %v44_v34 = vld [vmem:[%s1323_s1 + $0x50] sm:$0xff]  ;;  %v889_v36 = vpack.c.bf16 %v306_v30, %v305_v29  ;;  %v59_v38 = vadd.f32 %v43_v33, %v1135_v13  ;;  %v45_v40 = vld [vmem:[%s1323_s1 + $0x58] sm:$0xff]  ;;  %v46_v42 = vld [vmem:[%s1323_s1 + $0x60] sm:$0xff]  ;;  %s1027_s13 = scalar_lea.vmem %s663_s12, 16  ;;  %s1031_s14 = scalar_lea.vmem %s663_s12, 32 }
   0xf   :  { %943 = vtanh.f32 %v56_v25  ;;  %v60_v39 = vadd.f32 %v44_v34, %v1119_v6  ;;  %v61_v44 = vadd.f32 %v45_v40, %v1135_v13  ;;  %v62_v45 = vadd.f32 %v46_v42, %v1119_v6  ;;  %v47_v46 = vld [vmem:[%s1323_s1 + $0x68] sm:$0xff]  ;;  %v48_v48 = vld [vmem:[%s1323_s1 + $0x70] sm:$0xff]  ;;  %v49_v52 = vld [vmem:[%s1323_s1 + $0x78] sm:$0xff]  ;;  %p1028_p0 = scmp.ne.s32.totalorder %s663_s12, %s1027_s13  ;;  %p1032_p1 = scmp.lt.s32.totalorder %s663_s12, %s663_s12 }
  0x10   :  { %945 = vtanh.f32 %v57_v28  ;;  %v63_v50 = vadd.f32 %v47_v46, %v1135_v13  ;;  %v64_v51 = vadd.f32 %v48_v48, %v1119_v6  ;;  %v65_v55 = vadd.f32 %v49_v52, %v1135_v13  ;;  %v1221_v63 = vld [vmem:[%s1325_s3] ss:$0 sm:$0xff]  ;;  %vm1270_vm2 = vmpackc.low %vm93_vm0, %vm93_vm0  ;;  %p1033_p2 = scmp.lt.s32.totalorder %s1031_s14, %s1027_s13 }
  0x11   :  { %947 = vtanh.f32 %v58_v32  ;;  %v1051_v48 = vmov 0.0|0.0   ;;  %v1259_v52 = vld [vmem:[%s1327_s5] ss:$0 sm:$0xff] }
  0x12   :  { %v932_v31 = vpop.eup %931  ;;  %949 = vtanh.f32 %v59_v38  ;;  %893 = vmatprep.subr.bf16.mxu0 %v1051_v48  ;;  %p1034_p3 = por %p1033_p2, %p1032_p1 }
  0x13   :  { %786 = vmatprep.mubr.msk.f32.mxu1 %vm93_vm0, %v932_v31  ;;  %v934_v35 = vpop.eup %933  ;;  %951 = vtanh.f32 %v60_v39 }
  0x14   :  { %v936_v37 = vpop.eup %935  ;;  %953 = vtanh.f32 %v61_v44  ;;  %p1035_p4 = pnand %p1034_p3, %p1028_p0 }
  0x15   :  { %787 = vmatmul.mubr.msk.f32.vlgmr.msra.gmra.mrb[0].mxu1 %vm93_vm0, %v936_v37  ;;  %955 = vtanh.f32 %v62_v45 }
  0x16   :  { %v938_v41 = vpop.eup %937  ;;  %789 = vmatprep.mubr.msk.f32.mxu1 %vm93_vm0, %v934_v35  ;;  %888 = vmatpush3.bf16.msra.mxu1 %v885_v23  ;;  %957 = vtanh.f32 %v63_v50  ;;  %v524_v50 = vld [vmem:[#allocation2] sm:$0x1] }
  0x17   :  { %v940_v43 = vpop.eup %939  ;;  %890 = vmatprep.subr.bf16.mxu1 %v889_v36  ;;  %959 = vtanh.f32 %v64_v51  ;;  %v1054_v51 = vmov 0  }
  0x18   :  { %v942_v47 = vpop.eup %941  ;;  %961 = vtanh.f32 %v65_v55  ;;  %930 = vset.pattern.permute.xlu0 %v1054_v51 }
  0x19   :  { %790 = vmatmul.mubr.msk.f32.gmra.mrb[2].mxu1 %vm93_vm0, %v938_v41  ;;  %v944_v49 = vpop.eup %943  ;;  %527 = vperm.xlu0 %930, %v524_v50  }
  0x1a   :  { %792 = vmatprep.mubr.msk.f32.mxu1 %vm93_vm0, %v940_v43  ;;  %892 = vmatpush3.bf16.msra.mxu1 %v889_v36  ;;  %v946_v53 = vpop.eup %945 }
  0x1b   :  { %v948_v54 = vpop.eup %947 }
  0x1c   :  { %v950_v56 = vpop.eup %949 }
  0x1d   :  { %793 = vmatmul.mubr.msk.f32.gmra.mrb[4].mxu1 %vm93_vm0, %v942_v47  ;;  %v952_v57 = vpop.eup %951 }
  0x1e   :  { %795 = vmatprep.mubr.msk.f32.mxu1 %vm93_vm0, %v944_v49  ;;  %v954_v58 = vpop.eup %953  ;;  %v1053_v49 = vmov 0.0  }
  0x1f   :  { %v956_v59 = vpop.eup %955  ;;  %874 = vmatprep.mubr.msk.f32.mxu0 %vm1052_vm1, %v1053_v49 }
  0x20   :  { %v958_v60 = vpop.eup %957 }
  0x21   :  { %796 = vmatmul.mubr.msk.f32.gmra.mrb[6].mxu1 %vm93_vm0, %v946_v53  ;;  %v960_v61 = vpop.eup %959 }
  0x22   :  { %798 = vmatprep.mubr.msk.f32.mxu1 %vm93_vm0, %v948_v54  ;;  %v962_v62 = vpop.eup %961 }
  0x25   :  { %799 = vmatmul.mubr.msk.f32.gmra.mrb[8].mxu1 %vm93_vm0, %v950_v56 }
  0x26   :  { %801 = vmatprep.mubr.msk.f32.mxu1 %vm93_vm0, %v952_v57 }
  0x29   :  { %802 = vmatmul.mubr.msk.f32.gmra.mrb[10].mxu1 %vm93_vm0, %v954_v58 }
  0x2a   :  { %804 = vmatprep.mubr.msk.f32.mxu1 %vm93_vm0, %v956_v59 }
  0x2d   :  { %805 = vmatmul.mubr.msk.f32.gmra.mrb[12].mxu1 %vm93_vm0, %v958_v60 }
  0x2e   :  { %807 = vmatprep.mubr.msk.f32.mxu1 %vm93_vm0, %v960_v61 }
  0x31   :  { %808 = vmatmul.mubr.msk.f32.gmra.mrb[14].mxu1 %vm93_vm0, %v962_v62 }
  0x98   :  { %v528_v51 = vpop.permute.xlu0 %527 }
  0xe8   :  { %v788_v0 = vpop.f32.mrb[0].mxu1 }
  0xe9   :  { %v214_v1 = vadd.f32 %v788_v0, %v1221_v63  ;;  %v208_v2 = vpop.f32.mrb[1].mxu1 }
  0xea   :  { %v209_v3 = vadd.f32 %v1221_v63, %v208_v2 }
  0xec   :  { %963 = vtanh.f32 %v209_v3  ;;  %v791_v4 = vpop.f32.mrb[2].mxu1 }
  0xed   :  { %965 = vtanh.f32 %v214_v1  ;;  %v224_v5 = vadd.f32 %v791_v4, %v1221_v63  ;;  %v218_v6 = vpop.f32.mrb[3].mxu1 }
  0xee   :  { %v219_v7 = vadd.f32 %v1221_v63, %v218_v6 }
  0xef   :  { %967 = vtanh.f32 %v224_v5 }
  0xf0   :  { %969 = vtanh.f32 %v219_v7  ;;  %v794_v8 = vpop.f32.mrb[4].mxu1 }
  0xf1   :  { %v234_v9 = vadd.f32 %v794_v8, %v1221_v63  ;;  %v228_v10 = vpop.f32.mrb[5].mxu1 }
  0xf2   :  { %v229_v11 = vadd.f32 %v1221_v63, %v228_v10 }
  0xf3   :  { %971 = vtanh.f32 %v234_v9 }
  0xf4   :  { %973 = vtanh.f32 %v229_v11  ;;  %v797_v12 = vpop.f32.mrb[6].mxu1 }
  0xf5   :  { %v244_v13 = vadd.f32 %v797_v12, %v1221_v63  ;;  %v238_v14 = vpop.f32.mrb[7].mxu1 }
  0xf6   :  { %v964_v15 = vpop.eup %963  ;;  %v239_v16 = vadd.f32 %v1221_v63, %v238_v14 }
  0xf7   :  { %v966_v17 = vpop.eup %965  ;;  %818 = vmatprep.mubr.msk.f32.mxu1 %vm93_vm0, %v964_v15  ;;  %975 = vtanh.f32 %v244_v13 }
  0xf8   :  { %819 = vmatmul.mubr.msk.f32.vlgmr.msra.gmra.mrb[16].mxu1 %vm93_vm0, %v966_v17  ;;  %977 = vtanh.f32 %v239_v16  ;;  %v800_v18 = vpop.f32.mrb[8].mxu1 }
  0xf9   :  { %v968_v19 = vpop.eup %967  ;;  %v254_v20 = vadd.f32 %v800_v18, %v1221_v63  ;;  %v248_v21 = vpop.f32.mrb[9].mxu1 }
  0xfa   :  { %v970_v22 = vpop.eup %969  ;;  %v249_v23 = vadd.f32 %v1221_v63, %v248_v21 }
  0xfb   :  { %821 = vmatprep.mubr.msk.f32.mxu1 %vm93_vm0, %v970_v22  ;;  %979 = vtanh.f32 %v254_v20 }
  0xfc   :  { %822 = vmatmul.mubr.msk.f32.gmra.mrb[18].mxu1 %vm93_vm0, %v968_v19  ;;  %981 = vtanh.f32 %v249_v23  ;;  %v803_v24 = vpop.f32.mrb[10].mxu1 }
  0xfd   :  { %v972_v25 = vpop.eup %971  ;;  %v264_v26 = vadd.f32 %v803_v24, %v1221_v63  ;;  %v258_v27 = vpop.f32.mrb[11].mxu1 }
  0xfe   :  { %v974_v28 = vpop.eup %973  ;;  %v259_v29 = vadd.f32 %v1221_v63, %v258_v27 }
  0xff   :  { %824 = vmatprep.mubr.msk.f32.mxu1 %vm93_vm0, %v974_v28  ;;  %983 = vtanh.f32 %v264_v26 }
 0x100   :  { %825 = vmatmul.mubr.msk.f32.gmra.mrb[20].mxu1 %vm93_vm0, %v972_v25  ;;  %985 = vtanh.f32 %v259_v29  ;;  %v806_v30 = vpop.f32.mrb[12].mxu1 }
 0x101   :  { %v976_v31 = vpop.eup %975  ;;  %v274_v32 = vadd.f32 %v806_v30, %v1221_v63  ;;  %v268_v33 = vpop.f32.mrb[13].mxu1 }
 0x102   :  { %v978_v34 = vpop.eup %977  ;;  %v269_v35 = vadd.f32 %v1221_v63, %v268_v33 }
 0x103   :  { %827 = vmatprep.mubr.msk.f32.mxu1 %vm93_vm0, %v978_v34  ;;  %987 = vtanh.f32 %v274_v32 }
 0x104   :  { %828 = vmatmul.mubr.msk.f32.gmra.mrb[22].mxu1 %vm93_vm0, %v976_v31  ;;  %989 = vtanh.f32 %v269_v35  ;;  %v809_v36 = vpop.f32.mrb[14].mxu1 }
 0x105   :  { %v980_v37 = vpop.eup %979  ;;  %v284_v38 = vadd.f32 %v809_v36, %v1221_v63  ;;  %v278_v39 = vpop.f32.mrb[15].mxu1 }
 0x106   :  { %v982_v40 = vpop.eup %981  ;;  %v279_v41 = vadd.f32 %v1221_v63, %v278_v39 }
 0x107   :  { %830 = vmatprep.mubr.msk.f32.mxu1 %vm93_vm0, %v982_v40  ;;  %991 = vtanh.f32 %v284_v38 }
 0x108   :  { %831 = vmatmul.mubr.msk.f32.gmra.mrb[24].mxu1 %vm93_vm0, %v980_v37  ;;  %993 = vtanh.f32 %v279_v41 }
 0x109   :  { %v984_v42 = vpop.eup %983 }
 0x10a   :  { %v986_v43 = vpop.eup %985 }
 0x10b   :  { %833 = vmatprep.mubr.msk.f32.mxu1 %vm93_vm0, %v986_v43 }
 0x10c   :  { %834 = vmatmul.mubr.msk.f32.gmra.mrb[26].mxu1 %vm93_vm0, %v984_v42 }
 0x10d   :  { %v988_v44 = vpop.eup %987 }
 0x10e   :  { %v990_v45 = vpop.eup %989 }
 0x10f   :  { %836 = vmatprep.mubr.msk.f32.mxu1 %vm93_vm0, %v990_v45 }
 0x110   :  { %837 = vmatmul.mubr.msk.f32.gmra.mrb[28].mxu1 %vm93_vm0, %v988_v44 }
 0x111   :  { %v992_v46 = vpop.eup %991 }
 0x112   :  { %v994_v47 = vpop.eup %993 }
 0x113   :  { %839 = vmatprep.mubr.msk.f32.mxu1 %vm93_vm0, %v994_v47  ;;  %v530_v47 = vlaneseq }
 0x114   :  { %840 = vmatmul.mubr.msk.f32.gmra.mrb[30].mxu1 %vm93_vm0, %v992_v46  ;;  %v523_v46 = vld [vmem:[%s1328_s6] sm:$0x1] }
 0x115   :  { %v531_v49 = vshrl.u32 %v530_v47, 7 }
 0x117   :  { %v532_v50 = vsub.s32 0, %v531_v49 }
 0x1cb   :  { %v820_v53 = vpop.f32.mrb[16].mxu1 }
 0x1cc   :  { %v434_v54 = vadd.f32 %v820_v53, %v1259_v52  ;;  %v428_v55 = vpop.f32.mrb[17].mxu1 }
 0x1cd   :  { %v429_v56 = vadd.f32 %v1259_v52, %v428_v55 }
 0x1ce   :  { %995 = vtanh.f32 %v434_v54 }
 0x1cf   :  { %997 = vtanh.f32 %v429_v56  ;;  %v823_v57 = vpop.f32.mrb[18].mxu1 }
 0x1d0   :  { %v444_v58 = vadd.f32 %v823_v57, %v1259_v52  ;;  %v438_v59 = vpop.f32.mrb[19].mxu1 }
 0x1d1   :  { %v439_v60 = vadd.f32 %v1259_v52, %v438_v59 }
 0x1d2   :  { %999 = vtanh.f32 %v444_v58 }
 0x1d3   :  { %1001 = vtanh.f32 %v439_v60  ;;  %v826_v61 = vpop.f32.mrb[20].mxu1 }
 0x1d4   :  { %v454_v62 = vadd.f32 %v826_v61, %v1259_v52  ;;  %v448_v63 = vpop.f32.mrb[21].mxu1 }
 0x1d5   :  { %v449_v0 = vadd.f32 %v1259_v52, %v448_v63 }
 0x1d6   :  { %1003 = vtanh.f32 %v454_v62 }
 0x1d7   :  { %1005 = vtanh.f32 %v449_v0  ;;  %v829_v1 = vpop.f32.mrb[22].mxu1 }
 0x1d8   :  { %v996_v2 = vpop.eup %995  ;;  %v464_v3 = vadd.f32 %v829_v1, %v1259_v52  ;;  %v458_v4 = vpop.f32.mrb[23].mxu1 }
 0x1d9   :  { %v998_v5 = vpop.eup %997  ;;  %v459_v7 = vadd.f32 %v1259_v52, %v458_v4 }
 0x1da   :  { %v894_v8 = vpack.c.bf16 %v996_v2, %v998_v5  ;;  %1007 = vtanh.f32 %v464_v3 }
 0x1db   :  { %1009 = vtanh.f32 %v459_v7  ;;  %v832_v9 = vpop.f32.mrb[24].mxu1 }
 0x1dc   :  { %v1000_v10 = vpop.eup %999  ;;  %896 = vmatpush3.bf16.xpose.msk.msra.mxu0 %vm1270_vm2, %v894_v8  ;;  %v474_v11 = vadd.f32 %v832_v9, %v1259_v52  ;;  %v468_v12 = vpop.f32.mrb[25].mxu1 }
 0x1dd   :  { %v1002_v13 = vpop.eup %1001  ;;  %897 = vmatprep.subr.bf16.mxu0 %v1051_v48  ;;  %v469_v14 = vadd.f32 %v1259_v52, %v468_v12 }
 0x1de   :  { %v898_v15 = vpack.c.bf16 %v1000_v10, %v1002_v13  ;;  %1011 = vtanh.f32 %v474_v11 }
 0x1df   :  { %1013 = vtanh.f32 %v469_v14  ;;  %v835_v16 = vpop.f32.mrb[26].mxu1 }
 0x1e0   :  { %v1004_v17 = vpop.eup %1003  ;;  %v484_v18 = vadd.f32 %v835_v16, %v1259_v52  ;;  %v478_v19 = vpop.f32.mrb[27].mxu1 }
 0x1e1   :  { %v1006_v20 = vpop.eup %1005  ;;  %v479_v21 = vadd.f32 %v1259_v52, %v478_v19 }
 0x1e2   :  { %v902_v22 = vpack.c.bf16 %v1004_v17, %v1006_v20  ;;  %1015 = vtanh.f32 %v484_v18 }
 0x1e3   :  { %1017 = vtanh.f32 %v479_v21  ;;  %v838_v23 = vpop.f32.mrb[28].mxu1 }
 0x1e4   :  { %v1008_v24 = vpop.eup %1007  ;;  %900 = vmatpush3.bf16.xpose.msk.msra.mxu0 %vm1270_vm2, %v898_v15  ;;  %v494_v25 = vadd.f32 %v838_v23, %v1259_v52  ;;  %v488_v26 = vpop.f32.mrb[29].mxu1 }
 0x1e5   :  { %v1010_v27 = vpop.eup %1009  ;;  %901 = vmatprep.subr.bf16.mxu0 %v1051_v48  ;;  %v489_v28 = vadd.f32 %v1259_v52, %v488_v26 }
 0x1e6   :  { %v906_v29 = vpack.c.bf16 %v1008_v24, %v1010_v27  ;;  %1019 = vtanh.f32 %v494_v25 }
 0x1e7   :  { %1021 = vtanh.f32 %v489_v28  ;;  %v841_v30 = vpop.f32.mrb[30].mxu1 }
 0x1e8   :  { %v1012_v31 = vpop.eup %1011  ;;  %v504_v32 = vadd.f32 %v841_v30, %v1259_v52  ;;  %v498_v33 = vpop.f32.mrb[31].mxu1 }
 0x1e9   :  { %v1014_v34 = vpop.eup %1013  ;;  %v499_v35 = vadd.f32 %v1259_v52, %v498_v33  ;;  %v533_v52 = vrot.slane %v528_v51, %v532_v50 }
 0x1ea   :  { %v910_v36 = vpack.c.bf16 %v1012_v31, %v1014_v34  ;;  %1023 = vtanh.f32 %v504_v32 }
 0x1eb   :  { %1025 = vtanh.f32 %v499_v35 }
 0x1ec   :  { %v1016_v37 = vpop.eup %1015  ;;  %904 = vmatpush3.bf16.xpose.msk.msra.mxu0 %vm1270_vm2, %v902_v22 }
 0x1ed   :  { %v1018_v38 = vpop.eup %1017  ;;  %905 = vmatprep.subr.bf16.mxu0 %v1051_v48 }
 0x1ee   :  { %v914_v39 = vpack.c.bf16 %v1016_v37, %v1018_v38 }
 0x1f0   :  { %v1020_v40 = vpop.eup %1019 }
 0x1f1   :  { %v1022_v41 = vpop.eup %1021 }
 0x1f2   :  { %v918_v42 = vpack.c.bf16 %v1020_v40, %v1022_v41 }
 0x1f4   :  { %v1024_v43 = vpop.eup %1023  ;;  %908 = vmatpush3.bf16.xpose.msk.msra.mxu0 %vm1270_vm2, %v906_v29 }
 0x1f5   :  { %v1026_v44 = vpop.eup %1025  ;;  %909 = vmatprep.subr.bf16.mxu0 %v1051_v48 }
 0x1f6   :  { %v922_v45 = vpack.c.bf16 %v1024_v43, %v1026_v44 }
 0x1fc   :  { %912 = vmatpush3.bf16.xpose.msk.msra.mxu0 %vm1270_vm2, %v910_v36 }
 0x1fd   :  { %913 = vmatprep.subr.bf16.mxu0 %v1051_v48 }
 0x204   :  { %916 = vmatpush3.bf16.xpose.msk.msra.mxu0 %vm1270_vm2, %v914_v39 }
 0x205   :  { %917 = vmatprep.subr.bf16.mxu0 %v1051_v48 }
 0x20c   :  { %920 = vmatpush3.bf16.xpose.msk.msra.mxu0 %vm1270_vm2, %v918_v42 }
 0x20d   :  { %921 = vmatprep.subr.bf16.mxu0 %v1051_v48 }
 0x214   :  { %924 = vmatpush3.bf16.xpose.msk.msra.mxu0 %vm1270_vm2, %v922_v45 }
 0x21b   :  { %875 = vmatmul.mubr.msk.f32.vlgmr.msra.gmra.mrb[0].mxu0 %vm93_vm0, %v523_v46 }
 0x2ee   :  { %v651_v53 = vpop.f32.mrb[0].mxu0 }
 0x2ef   :  { %v652_v54 = vadd.f32 %v651_v53, %v533_v52  ;;  %v876_v55 = vpop.f32.mrb[1].mxu0 }
 0x2f1   :  { %655 = vst [vmem:[#allocation3] sm:$0x1] %v652_v54 }
 0x2f2   :  { %1038 = shalt.err (!%p1035_p4)
}
 0x2f3   :  { %s1039_s7 = scalar_lea.hbm %s1330_s8, 16 }
 0x2f4   :  { %p1040_p5 = scmp.ne.s32.totalorder %s1330_s8, %s1039_s7  ;;  %p1043_p6 = scmp.lt.u32.totalorder %s1039_s7, %s1330_s8 }
 0x2f6   :  { %p1045_p7 = pnand %p1043_p6, %p1040_p5 }
 0x2f8   :  { %1048 = shalt.err (!%p1045_p7)
}
 0x2f9   :  { %665 = dma.vmem_to_hbm [thread:$0]  %s663_s12, 16, %s1330_s8, [#allocation4]  }
 0x2fa   :  { %1049 = dma.done.wait [#allocation4], 16  }
 0x2fb   :  { %1050 = vsyncadd [#allocation4], 4294967280 }
 0x2fc   :  { %669 = vsyncpa [#allocation4], 1 }

</bundles_post_ra>
